<compile_context>
chip_gen: v5e
topology: v5e:2x2
jax: 0.10.0
libtpu: 0.0.40
codegen_flags: <defaults>
</compile_context>

<pallas_src>
import functools

import jax
import jax.numpy as jnp
from jax.experimental import pallas as pl
from jax.experimental.pallas import tpu as pltpu

_BN_EPS = 1e-5
_LANE = 128                      # feature dims padded to multiples of this
_TK_IN_MAX = 512                 # max reduction tile over input features
_T_RESIDENT_BYTES = 4 * 1024 * 1024  # keep T VMEM-resident below this (bf16 bytes)


# ---------------------------------------------------------------------------
# Pallas kernels
# ---------------------------------------------------------------------------
def _transform_kernel(x_ref, w_ref, o_ref, acc_ref):
    """K-tiled feature transform: T = X @ W' (bf16 operands, f32 accumulation)."""
    k = pl.program_id(1)

    @pl.when(k == 0)
    def _():
        acc_ref[...] = jnp.zeros_like(acc_ref)

    acc_ref[...] += jnp.dot(
        x_ref[...], w_ref[...], preferred_element_type=jnp.float32
    )

    @pl.when(k == pl.num_programs(1) - 1)
    def _():
        o_ref[...] = acc_ref[...].astype(o_ref.dtype)


def _aggregate_kernel(a_ref, t_ref, b_ref, o_ref, acc_ref, *,
                      apply_relu, tk, t_resident):
    """Tiled aggregation: Y[i] = relu?(sum_k A_hat[i,k] @ T[k] + b')."""
    k = pl.program_id(1)

    @pl.when(k == 0)
    def _():
        acc_ref[...] = jnp.zeros_like(acc_ref)

    if t_resident:
        start = pl.multiple_of(k * tk, tk)
        t = t_ref[pl.ds(start, tk), :]
    else:
        t = t_ref[...]

    # bf16 x bf16 -> f32 accumulation on the MXU.
    acc_ref[...] += jnp.dot(a_ref[...], t, preferred_element_type=jnp.float32)

    @pl.when(k == pl.num_programs(1) - 1)
    def _():
        z = acc_ref[...] + b_ref[...]
        if apply_relu:
            z = jnp.maximum(z, 0.0)
        o_ref[...] = z.astype(o_ref.dtype)


# ---------------------------------------------------------------------------
# helpers
# ---------------------------------------------------------------------------
def _round_up(x, m):
    return ((x + m - 1) // m) * m


def _feat_pad(c):
    """Pad a feature dim so it is a multiple of the lane width and, when large,
    of the transform reduction tile (so K-tiling always divides evenly)."""
    c128 = _round_up(c, _LANE)
    if c128 <= _TK_IN_MAX:
        return c128
    return _round_up(c, _TK_IN_MAX)


def _pick_row_tile(num_nodes):
    """Large row tile for HBM-traffic amortization, but keep >= 2 row tiles
    (v7x megacore) and avoid over-padding small graphs."""
    n128 = _round_up(num_nodes, _LANE)
    for t in (512, 256, 128):
        if n128 >= 2 * t:
            return t
    return 128


def _pad2(a, rows, cols):
    return jnp.pad(a, ((0, rows - a.shape[0]), (0, cols - a.shape[1])))


# ---------------------------------------------------------------------------
# pallas_call wrappers
# ---------------------------------------------------------------------------
def _transform(h_pad_bf16, w_pad_bf16, tm):
    n_pad, f_in = h_pad_bf16.shape
    f_out = w_pad_bf16.shape[1]
    tk_in = min(f_in, _TK_IN_MAX)

    cost = pl.CostEstimate(
        flops=2 * n_pad * f_in * f_out,
        transcendentals=0,
        bytes_accessed=n_pad * f_in * 2 + f_in * f_out * 2 + n_pad * f_out * 2,
    )
    return pl.pallas_call(
        _transform_kernel,
        out_shape=jax.ShapeDtypeStruct((n_pad, f_out), jnp.bfloat16),
        grid=(n_pad // tm, f_in // tk_in),
        in_specs=[
            pl.BlockSpec((tm, tk_in), lambda i, k: (i, k)),
            pl.BlockSpec((tk_in, f_out), lambda i, k: (k, 0)),
        ],
        out_specs=pl.BlockSpec((tm, f_out), lambda i, k: (i, 0)),
        scratch_shapes=[pltpu.VMEM((tm, f_out), jnp.float32)],
        compiler_params=pltpu.CompilerParams(
            dimension_semantics=("parallel", "arbitrary")
        ),
        cost_estimate=cost,
    )(h_pad_bf16, w_pad_bf16)


def _aggregate(a_pad_bf16, t_bf16, b_pad, apply_relu, tm, tk, out_dtype):
    n_pad = a_pad_bf16.shape[0]
    f_out = t_bf16.shape[1]

    # Hold T fully VMEM-resident when small: aggregate then streams only A_hat.
    t_resident = (n_pad * f_out * 2) <= _T_RESIDENT_BYTES
    if t_resident:
        t_spec = pl.BlockSpec((n_pad, f_out), lambda i, k: (0, 0))
    else:
        t_spec = pl.BlockSpec((tk, f_out), lambda i, k: (k, 0))

    out_bytes = 2 if out_dtype == jnp.bfloat16 else 4
    cost = pl.CostEstimate(
        flops=2 * n_pad * n_pad * f_out,
        transcendentals=0,
        bytes_accessed=(
            n_pad * n_pad * 2 + n_pad * f_out * 2 + f_out * 4
            + n_pad * f_out * out_bytes
        ),
    )
    kernel = functools.partial(
        _aggregate_kernel, apply_relu=apply_relu, tk=tk, t_resident=t_resident
    )
    return pl.pallas_call(
        kernel,
        out_shape=jax.ShapeDtypeStruct((n_pad, f_out), out_dtype),
        grid=(n_pad // tm, n_pad // tk),
        in_specs=[
            pl.BlockSpec((tm, tk), lambda i, k: (i, k)),      # A_hat tile
            t_spec,                                           # T (resident or tiled)
            pl.BlockSpec((1, f_out), lambda i, k: (0, 0)),    # folded bias
        ],
        out_specs=pl.BlockSpec((tm, f_out), lambda i, k: (i, 0)),
        scratch_shapes=[pltpu.VMEM((tm, f_out), jnp.float32)],
        compiler_params=pltpu.CompilerParams(
            dimension_semantics=("parallel", "arbitrary")
        ),
        cost_estimate=cost,
    )(a_pad_bf16, t_bf16, b_pad)


def gcn_layer(a_pad_bf16, h_pad_bf16, w, b, apply_relu, tm, tk):
    """One GCN layer on padded operands: relu?(A_hat @ (H @ W') + b')."""
    f_in_pad = h_pad_bf16.shape[1]
    f_out = w.shape[1]
    f_out_pad = _feat_pad(f_out)
    w_pad = _pad2(w, f_in_pad, f_out_pad).astype(jnp.bfloat16)
    b_pad = jnp.pad(b.astype(jnp.float32), (0, f_out_pad - f_out)).reshape(1, f_out_pad)

    t = _transform(h_pad_bf16, w_pad, tm)                    # [n_pad, f_out_pad] bf16
    out_dtype = jnp.bfloat16 if apply_relu else jnp.float32  # bf16 hidden, f32 final
    return _aggregate(a_pad_bf16, t, b_pad, apply_relu, tm, tk, out_dtype)


# ---------------------------------------------------------------------------
# Graph glue (plain JAX): dense normalized adjacency with self loops, bf16
# ---------------------------------------------------------------------------
def normalized_adjacency_bf16(edge_index, num_nodes, n_pad):
    """A_hat[i, j] = d_i^{-1/2} d_j^{-1/2} * (A + I)[i, j]; messages flow src -> dst.

    Built directly at padded size; the normalization scale and bf16 cast are one
    fused elementwise pass (no separate f32 pad/cast round-trip). Parallel edges
    are scatter-ADDed; self loops in the input are dropped and exactly one self
    loop per node is added (matches PyG add_remaining_self_loops + gcn_norm).
    """
    src = edge_index[0]
    dst = edge_index[1]
    ew = jnp.where(src != dst, 1.0, 0.0).astype(jnp.float32)
    ids = jnp.arange(num_nodes)
    adj = (
        jnp.zeros((n_pad, n_pad), jnp.float32)
        .at[dst, src].add(ew)
        .at[ids, ids].add(1.0)
    )
    deg = adj.sum(axis=1)
    dinv = jnp.where(deg > 0, jax.lax.rsqrt(deg), 0.0)
    return (adj * dinv[:, None] * dinv[None, :]).astype(jnp.bfloat16)


def _fold_bn(w, b, gamma, beta, rmean, rvar):
    """Fold eval-mode BatchNorm1d into the conv weight/bias."""
    s = gamma * jax.lax.rsqrt(rvar + _BN_EPS)
    return w * s[None, :], (b - rmean) * s + beta


# ---------------------------------------------------------------------------
# Parameters (deterministic init) + full forward pass
# ---------------------------------------------------------------------------
def init_params(key, in_channels, hidden_channels, out_channels, num_layers=3):
    dims = [in_channels] + [hidden_channels] * (num_layers - 1) + [out_channels]
    params = {"convs": [], "bns": []}
    for li in range(num_layers):
        key, kw, kb = jax.random.split(key, 3)
        fan_in, fan_out = dims[li], dims[li + 1]
        scale = jnp.sqrt(6.0 / (fan_in + fan_out))  # glorot-uniform, like PyG GCNConv
        w = jax.random.uniform(kw, (fan_in, fan_out), jnp.float32, -scale, scale)
        b = jax.random.uniform(kb, (fan_out,), jnp.float32, -0.1, 0.1)
        params["convs"].append((w, b))
    for _ in range(num_layers - 1):
        key, kg, kbt, km, kv = jax.random.split(key, 5)
        f = hidden_channels
        gamma = jax.random.uniform(kg, (f,), jnp.float32, 0.5, 1.5)
        beta = jax.random.uniform(kbt, (f,), jnp.float32, -0.5, 0.5)
        rmean = jax.random.uniform(km, (f,), jnp.float32, -0.5, 0.5)
        rvar = jax.random.uniform(kv, (f,), jnp.float32, 0.5, 1.5)
        params["bns"].append((gamma, beta, rmean, rvar))
    return params


@functools.partial(jax.jit, static_argnames=("num_nodes",))
def enhanced_gcn_forward(x, edge_index, params, num_nodes):
    tm = _pick_row_tile(num_nodes)
    tk = tm
    n_pad = _round_up(num_nodes, tm)

    # Dense normalized adjacency, built padded + bf16 in one pass.
    a_pad = normalized_adjacency_bf16(edge_index, num_nodes, n_pad)

    # Node features, zero-padded and cast to bf16 for the MXU.
    h = _pad2(x, n_pad, _feat_pad(x.shape[1])).astype(jnp.bfloat16)

    num_layers = len(params["convs"])
    for li in range(num_layers - 1):
        w, b = params["convs"][li]
        gamma, beta, rmean, rvar = params["bns"][li]
        w_f, b_f = _fold_bn(w, b, gamma, beta, rmean, rvar)
        h = gcn_layer(a_pad, h, w_f, b_f, apply_relu=True, tm=tm, tk=tk)  # bf16
        # Dropout: identity in eval mode.

    w, b = params["convs"][-1]
    out = gcn_layer(a_pad, h, w, b, apply_relu=False, tm=tm, tk=tk)       # f32
    return out[:num_nodes, : w.shape[1]]


# ---------------------------------------------------------------------------
if __name__ == "__main__":
    N, IN_C, HID, OUT_C, NUM_LAYERS = 16, 8, 32, 4, 3

    key = jax.random.PRNGKey(0)
    k_x, k_src, k_dst, k_params = jax.random.split(key, 4)

    x = jax.random.normal(k_x, (N, IN_C), jnp.float32)

    # Random undirected edge set (edge_index: [2, E], row 0 = src, row 1 = dst).
    E_half = 40
    src = jax.random.randint(k_src, (E_half,), 0, N)
    dst = jax.random.randint(k_dst, (E_half,), 0, N)
    edge_index = jnp.stack(
        [jnp.concatenate([src, dst]), jnp.concatenate([dst, src])], axis=0
    ).astype(jnp.int32)

    params = init_params(k_params, IN_C, HID, OUT_C, NUM_LAYERS)

    out = enhanced_gcn_forward(x, edge_index, params, num_nodes=N)
    out = jax.block_until_ready(out)

    assert out.shape == (N, OUT_C), out.shape
    assert out.dtype == jnp.float32
    assert bool(jnp.all(jnp.isfinite(out)))
    print("KERNEL_OK")
</pallas_src>

<mosaic_0001>
module attributes {stable_mosaic.version = 11 : i64} {
  func.func @_transform_kernel(%arg0: i32, %arg1: i32, %arg2: memref<128x128xbf16, #tpu.memory_space<vmem>>, %arg3: memref<128x128xbf16, #tpu.memory_space<vmem>>, %arg4: memref<128x128xbf16, #tpu.memory_space<vmem>>, %arg5: memref<128x128xf32, #tpu.memory_space<vmem>>) attributes {dimension_semantics = [#tpu.dimension_semantics<parallel>, #tpu.dimension_semantics<arbitrary>], iteration_bounds = array<i64: 1, 1>, scalar_prefetch = 0 : i64, scratch_operands = 1 : i64, tpu.core_type = #tpu.core_type<tc>, window_params = [{transform_indices = @transform_0, window_bounds = array<i64: 128, 128>}, {transform_indices = @transform_1, window_bounds = array<i64: 128, 128>}, {transform_indices = @transform_2, window_bounds = array<i64: 128, 128>}]} {
    %c0_i32 = arith.constant 0 : i32
    %0 = arith.cmpi eq, %arg1, %c0_i32 : i32
    %1 = arith.extui %0 : i1 to i32
    %c0_i32_0 = arith.constant 0 : i32
    %2 = arith.cmpi ne, %1, %c0_i32_0 : i32
    scf.if %2 {
      %cst_10 = arith.constant 0.000000e+00 : f32
      %12 = vector.broadcast %cst_10 : f32 to vector<128x128xf32>
      %c0_11 = arith.constant 0 : index
      %c0_12 = arith.constant 0 : index
      %13 = vector.load %arg5[%c0_11, %c0_12] : memref<128x128xf32, #tpu.memory_space<vmem>>, vector<128x128xf32>
      tpu.vector_store %arg5[%c0_11, %c0_12], %12 {strides = array<i32>} : memref<128x128xf32, #tpu.memory_space<vmem>>, vector<128x128xf32>,
    } else {
    }
    %c0 = arith.constant 0 : index
    %c0_1 = arith.constant 0 : index
    %3 = vector.load %arg5[%c0, %c0_1] : memref<128x128xf32, #tpu.memory_space<vmem>>, vector<128x128xf32>
    %c0_2 = arith.constant 0 : index
    %c0_3 = arith.constant 0 : index
    %4 = vector.load %arg2[%c0_2, %c0_3] : memref<128x128xbf16, #tpu.memory_space<vmem>>, vector<128x128xbf16>
    %c0_4 = arith.constant 0 : index
    %c0_5 = arith.constant 0 : index
    %5 = vector.load %arg3[%c0_4, %c0_5] : memref<128x128xbf16, #tpu.memory_space<vmem>>, vector<128x128xbf16>
    %cst = arith.constant dense<0.000000e+00> : vector<128x128xf32>
    %6 = tpu.matmul %4, %5, %cst {dimension_numbers = #tpu.dot_dimension_numbers<[1], [0], [0], [1], [0, 0, 1, 1], [], []>} : vector<128x128xbf16>, vector<128x128xbf16>, vector<128x128xf32> -> vector<128x128xf32>
    %7 = arith.addf %3, %6 : vector<128x128xf32>
    %c0_6 = arith.constant 0 : index
    %c0_7 = arith.constant 0 : index
    %8 = vector.load %arg5[%c0_6, %c0_7] : memref<128x128xf32, #tpu.memory_space<vmem>>, vector<128x128xf32>
    tpu.vector_store %arg5[%c0_6, %c0_7], %7 {strides = array<i32>} : memref<128x128xf32, #tpu.memory_space<vmem>>, vector<128x128xf32>,
    %c0_i32_8 = arith.constant 0 : i32
    %9 = arith.cmpi eq, %arg1, %c0_i32_8 : i32
    %10 = arith.extui %9 : i1 to i32
    %c0_i32_9 = arith.constant 0 : i32
    %11 = arith.cmpi ne, %10, %c0_i32_9 : i32
    scf.if %11 {
      %c0_10 = arith.constant 0 : index
      %c0_11 = arith.constant 0 : index
      %12 = vector.load %arg5[%c0_10, %c0_11] : memref<128x128xf32, #tpu.memory_space<vmem>>, vector<128x128xf32>
      %13 = arith.truncf %12 : vector<128x128xf32> to vector<128x128xbf16>
      %c0_12 = arith.constant 0 : index
      %c0_13 = arith.constant 0 : index
      %14 = vector.load %arg4[%c0_12, %c0_13] : memref<128x128xbf16, #tpu.memory_space<vmem>>, vector<128x128xbf16>
      tpu.vector_store %arg4[%c0_12, %c0_13], %13 {strides = array<i32>} : memref<128x128xbf16, #tpu.memory_space<vmem>>, vector<128x128xbf16>,
    } else {
    }
    return
  }
  func.func @transform_0(%arg0: i32, %arg1: i32) -> (i32, i32) {
    %c0_i32 = arith.constant 0 : i32
    return %arg0, %arg1 : i32, i32
  }
  func.func @transform_1(%arg0: i32, %arg1: i32) -> (i32, i32) {
    %c0_i32 = arith.constant 0 : i32
    %c0_i32_0 = arith.constant 0 : i32
    return %arg1, %c0_i32 : i32, i32
  }
  func.func @transform_2(%arg0: i32, %arg1: i32) -> (i32, i32) {
    %c0_i32 = arith.constant 0 : i32
    %c0_i32_0 = arith.constant 0 : i32
    return %arg0, %c0_i32 : i32, i32
  }
}

module attributes {stable_mosaic.version = 11 : i64} {
  func.func @_aggregate_kernel(%arg0: i32, %arg1: i32, %arg2: memref<128x128xbf16, #tpu.memory_space<vmem>>, %arg3: memref<128x128xbf16, #tpu.memory_space<vmem>>, %arg4: memref<1x128xf32, #tpu.memory_space<vmem>>, %arg5: memref<128x128xbf16, #tpu.memory_space<vmem>>, %arg6: memref<128x128xf32, #tpu.memory_space<vmem>>) attributes {dimension_semantics = [#tpu.dimension_semantics<parallel>, #tpu.dimension_semantics<arbitrary>], iteration_bounds = array<i64: 1, 1>, scalar_prefetch = 0 : i64, scratch_operands = 1 : i64, tpu.core_type = #tpu.core_type<tc>, window_params = [{transform_indices = @transform_0, window_bounds = array<i64: 128, 128>}, {pipeline_mode = #tpu.pipeline_mode<synchronous>, transform_indices = @transform_1, window_bounds = array<i64: 128, 128>}, {pipeline_mode = #tpu.pipeline_mode<synchronous>, transform_indices = @transform_2, window_bounds = array<i64: 1, 128>}, {transform_indices = @transform_3, window_bounds = array<i64: 128, 128>}]} {
    %c0_i32 = arith.constant 0 : i32
    %0 = arith.cmpi eq, %arg1, %c0_i32 : i32
    %1 = arith.extui %0 : i1 to i32
    %c0_i32_0 = arith.constant 0 : i32
    %2 = arith.cmpi ne, %1, %c0_i32_0 : i32
    scf.if %2 {
      %cst_9 = arith.constant 0.000000e+00 : f32
      %15 = vector.broadcast %cst_9 : f32 to vector<128x128xf32>
      %c0_10 = arith.constant 0 : index
      %c0_11 = arith.constant 0 : index
      %16 = vector.load %arg6[%c0_10, %c0_11] : memref<128x128xf32, #tpu.memory_space<vmem>>, vector<128x128xf32>
      tpu.vector_store %arg6[%c0_10, %c0_11], %15 {strides = array<i32>} : memref<128x128xf32, #tpu.memory_space<vmem>>, vector<128x128xf32>,
    } else {
    }
    %c128_i32 = arith.constant 128 : i32
    %3 = arith.muli %arg1, %c128_i32 : i32
    %4 = tpu.assume_multiple %3, 128 : i32
    %5 = arith.index_cast %4 : i32 to index
    %c0 = arith.constant 0 : index
    %6 = vector.load %arg3[%5, %c0] : memref<128x128xbf16, #tpu.memory_space<vmem>>, vector<128x128xbf16>
    %c0_1 = arith.constant 0 : index
    %c0_2 = arith.constant 0 : index
    %7 = vector.load %arg6[%c0_1, %c0_2] : memref<128x128xf32, #tpu.memory_space<vmem>>, vector<128x128xf32>
    %c0_3 = arith.constant 0 : index
    %c0_4 = arith.constant 0 : index
    %8 = vector.load %arg2[%c0_3, %c0_4] : memref<128x128xbf16, #tpu.memory_space<vmem>>, vector<128x128xbf16>
    %cst = arith.constant dense<0.000000e+00> : vector<128x128xf32>
    %9 = tpu.matmul %8, %6, %cst {dimension_numbers = #tpu.dot_dimension_numbers<[1], [0], [0], [1], [0, 0, 1, 1], [], []>} : vector<128x128xbf16>, vector<128x128xbf16>, vector<128x128xf32> -> vector<128x128xf32>
    %10 = arith.addf %7, %9 : vector<128x128xf32>
    %c0_5 = arith.constant 0 : index
    %c0_6 = arith.constant 0 : index
    %11 = vector.load %arg6[%c0_5, %c0_6] : memref<128x128xf32, #tpu.memory_space<vmem>>, vector<128x128xf32>
    tpu.vector_store %arg6[%c0_5, %c0_6], %10 {strides = array<i32>} : memref<128x128xf32, #tpu.memory_space<vmem>>, vector<128x128xf32>,
    %c0_i32_7 = arith.constant 0 : i32
    %12 = arith.cmpi eq, %arg1, %c0_i32_7 : i32
    %13 = arith.extui %12 : i1 to i32
    %c0_i32_8 = arith.constant 0 : i32
    %14 = arith.cmpi ne, %13, %c0_i32_8 : i32
    scf.if %14 {
      %c0_9 = arith.constant 0 : index
      %c0_10 = arith.constant 0 : index
      %15 = vector.load %arg6[%c0_9, %c0_10] : memref<128x128xf32, #tpu.memory_space<vmem>>, vector<128x128xf32>
      %c0_11 = arith.constant 0 : index
      %c0_12 = arith.constant 0 : index
      %16 = vector.load %arg4[%c0_11, %c0_12] : memref<1x128xf32, #tpu.memory_space<vmem>>, vector<1x128xf32>
      %17 = vector.broadcast %16 : vector<1x128xf32> to vector<128x128xf32>
      %18 = arith.addf %15, %17 : vector<128x128xf32>
      %cst_13 = arith.constant 0.000000e+00 : f32
      %19 = vector.broadcast %cst_13 : f32 to vector<128x128xf32>
      %20 = arith.maximumf %18, %19 : vector<128x128xf32>
      %21 = arith.truncf %20 : vector<128x128xf32> to vector<128x128xbf16>
      %c0_14 = arith.constant 0 : index
      %c0_15 = arith.constant 0 : index
      %22 = vector.load %arg5[%c0_14, %c0_15] : memref<128x128xbf16, #tpu.memory_space<vmem>>, vector<128x128xbf16>
      tpu.vector_store %arg5[%c0_14, %c0_15], %21 {strides = array<i32>} : memref<128x128xbf16, #tpu.memory_space<vmem>>, vector<128x128xbf16>,
    } else {
    }
    return
  }
  func.func @transform_0(%arg0: i32, %arg1: i32) -> (i32, i32) {
    %c0_i32 = arith.constant 0 : i32
    return %arg0, %arg1 : i32, i32
  }
  func.func @transform_1(%arg0: i32, %arg1: i32) -> (i32, i32) {
    %c0_i32 = arith.constant 0 : i32
    %c0_i32_0 = arith.constant 0 : i32
    %c0_i32_1 = arith.constant 0 : i32
    return %c0_i32, %c0_i32_0 : i32, i32
  }
  func.func @transform_2(%arg0: i32, %arg1: i32) -> (i32, i32) {
    %c0_i32 = arith.constant 0 : i32
    %c0_i32_0 = arith.constant 0 : i32
    %c0_i32_1 = arith.constant 0 : i32
    return %c0_i32, %c0_i32_0 : i32, i32
  }
  func.func @transform_3(%arg0: i32, %arg1: i32) -> (i32, i32) {
    %c0_i32 = arith.constant 0 : i32
    %c0_i32_0 = arith.constant 0 : i32
    return %arg0, %c0_i32 : i32, i32
  }
}

module attributes {stable_mosaic.version = 11 : i64} {
  func.func @_aggregate_kernel(%arg0: i32, %arg1: i32, %arg2: memref<128x128xbf16, #tpu.memory_space<vmem>>, %arg3: memref<128x128xbf16, #tpu.memory_space<vmem>>, %arg4: memref<1x128xf32, #tpu.memory_space<vmem>>, %arg5: memref<128x128xf32, #tpu.memory_space<vmem>>, %arg6: memref<128x128xf32, #tpu.memory_space<vmem>>) attributes {dimension_semantics = [#tpu.dimension_semantics<parallel>, #tpu.dimension_semantics<arbitrary>], iteration_bounds = array<i64: 1, 1>, scalar_prefetch = 0 : i64, scratch_operands = 1 : i64, tpu.core_type = #tpu.core_type<tc>, window_params = [{transform_indices = @transform_0, window_bounds = array<i64: 128, 128>}, {pipeline_mode = #tpu.pipeline_mode<synchronous>, transform_indices = @transform_1, window_bounds = array<i64: 128, 128>}, {pipeline_mode = #tpu.pipeline_mode<synchronous>, transform_indices = @transform_2, window_bounds = array<i64: 1, 128>}, {transform_indices = @transform_3, window_bounds = array<i64: 128, 128>}]} {
    %c0_i32 = arith.constant 0 : i32
    %0 = arith.cmpi eq, %arg1, %c0_i32 : i32
    %1 = arith.extui %0 : i1 to i32
    %c0_i32_0 = arith.constant 0 : i32
    %2 = arith.cmpi ne, %1, %c0_i32_0 : i32
    scf.if %2 {
      %cst_9 = arith.constant 0.000000e+00 : f32
      %15 = vector.broadcast %cst_9 : f32 to vector<128x128xf32>
      %c0_10 = arith.constant 0 : index
      %c0_11 = arith.constant 0 : index
      %16 = vector.load %arg6[%c0_10, %c0_11] : memref<128x128xf32, #tpu.memory_space<vmem>>, vector<128x128xf32>
      tpu.vector_store %arg6[%c0_10, %c0_11], %15 {strides = array<i32>} : memref<128x128xf32, #tpu.memory_space<vmem>>, vector<128x128xf32>,
    } else {
    }
    %c128_i32 = arith.constant 128 : i32
    %3 = arith.muli %arg1, %c128_i32 : i32
    %4 = tpu.assume_multiple %3, 128 : i32
    %5 = arith.index_cast %4 : i32 to index
    %c0 = arith.constant 0 : index
    %6 = vector.load %arg3[%5, %c0] : memref<128x128xbf16, #tpu.memory_space<vmem>>, vector<128x128xbf16>
    %c0_1 = arith.constant 0 : index
    %c0_2 = arith.constant 0 : index
    %7 = vector.load %arg6[%c0_1, %c0_2] : memref<128x128xf32, #tpu.memory_space<vmem>>, vector<128x128xf32>
    %c0_3 = arith.constant 0 : index
    %c0_4 = arith.constant 0 : index
    %8 = vector.load %arg2[%c0_3, %c0_4] : memref<128x128xbf16, #tpu.memory_space<vmem>>, vector<128x128xbf16>
    %cst = arith.constant dense<0.000000e+00> : vector<128x128xf32>
    %9 = tpu.matmul %8, %6, %cst {dimension_numbers = #tpu.dot_dimension_numbers<[1], [0], [0], [1], [0, 0, 1, 1], [], []>} : vector<128x128xbf16>, vector<128x128xbf16>, vector<128x128xf32> -> vector<128x128xf32>
    %10 = arith.addf %7, %9 : vector<128x128xf32>
    %c0_5 = arith.constant 0 : index
    %c0_6 = arith.constant 0 : index
    %11 = vector.load %arg6[%c0_5, %c0_6] : memref<128x128xf32, #tpu.memory_space<vmem>>, vector<128x128xf32>
    tpu.vector_store %arg6[%c0_5, %c0_6], %10 {strides = array<i32>} : memref<128x128xf32, #tpu.memory_space<vmem>>, vector<128x128xf32>,
    %c0_i32_7 = arith.constant 0 : i32
    %12 = arith.cmpi eq, %arg1, %c0_i32_7 : i32
    %13 = arith.extui %12 : i1 to i32
    %c0_i32_8 = arith.constant 0 : i32
    %14 = arith.cmpi ne, %13, %c0_i32_8 : i32
    scf.if %14 {
      %c0_9 = arith.constant 0 : index
      %c0_10 = arith.constant 0 : index
      %15 = vector.load %arg6[%c0_9, %c0_10] : memref<128x128xf32, #tpu.memory_space<vmem>>, vector<128x128xf32>
      %c0_11 = arith.constant 0 : index
      %c0_12 = arith.constant 0 : index
      %16 = vector.load %arg4[%c0_11, %c0_12] : memref<1x128xf32, #tpu.memory_space<vmem>>, vector<1x128xf32>
      %17 = vector.broadcast %16 : vector<1x128xf32> to vector<128x128xf32>
      %18 = arith.addf %15, %17 : vector<128x128xf32>
      %c0_13 = arith.constant 0 : index
      %c0_14 = arith.constant 0 : index
      %19 = vector.load %arg5[%c0_13, %c0_14] : memref<128x128xf32, #tpu.memory_space<vmem>>, vector<128x128xf32>
      tpu.vector_store %arg5[%c0_13, %c0_14], %18 {strides = array<i32>} : memref<128x128xf32, #tpu.memory_space<vmem>>, vector<128x128xf32>,
    } else {
    }
    return
  }
  func.func @transform_0(%arg0: i32, %arg1: i32) -> (i32, i32) {
    %c0_i32 = arith.constant 0 : i32
    return %arg0, %arg1 : i32, i32
  }
  func.func @transform_1(%arg0: i32, %arg1: i32) -> (i32, i32) {
    %c0_i32 = arith.constant 0 : i32
    %c0_i32_0 = arith.constant 0 : i32
    %c0_i32_1 = arith.constant 0 : i32
    return %c0_i32, %c0_i32_0 : i32, i32
  }
  func.func @transform_2(%arg0: i32, %arg1: i32) -> (i32, i32) {
    %c0_i32 = arith.constant 0 : i32
    %c0_i32_0 = arith.constant 0 : i32
    %c0_i32_1 = arith.constant 0 : i32
    return %c0_i32, %c0_i32_0 : i32, i32
  }
  func.func @transform_3(%arg0: i32, %arg1: i32) -> (i32, i32) {
    %c0_i32 = arith.constant 0 : i32
    %c0_i32_0 = arith.constant 0 : i32
    return %arg0, %c0_i32 : i32, i32
  }
}

</mosaic_0001>

<bundles_post_ra>
// kernel: enhanced_gcn_forward.6
= control target key start
LH: loop header
LB: loop body
LE: loop exit
PB: predicated region body
PF: predicated region fallthrough
CT: control target
= control target key end

     0   :  { %s549_s1 = inlined_call_operand.vmem [shape: bf16[128,128], index: 1, kind: input, shape index: {}]   ;;  %s550_s0 = inlined_call_operand.vmem [shape: bf16[128,128], index: 0, kind: input, shape index: {}]   ;;  %s551_s2 = inlined_call_operand.vmem [shape: bf16[128,128], index: 2, kind: output, shape index: {}]  }
   0x1   :  { %v390_v0 = vld [vmem:[%s549_s1 + $0x38] sm:$0xff]  ;;  %v389_v1 = vld [vmem:[%s549_s1 + $0x30] sm:$0xff]  ;;  %v388_v2 = vld [vmem:[%s549_s1 + $0x28] sm:$0xff] }
   0x2   :  { %175 = vmatpush.bf16.msra.mxu0 %v390_v0  ;;  %438 = vmatpush.bf16.msra.mxu1 %v390_v0  ;;  %v387_v3 = vld [vmem:[%s549_s1 + $0x20] sm:$0xff]  ;;  %v386_v4 = vld [vmem:[%s549_s1 + $0x18] sm:$0xff]  ;;  %v385_v5 = vld [vmem:[%s549_s1 + $0x10] sm:$0xff] }
   0x3   :  { %439 = vmatpush.bf16.msra.mxu2 %v390_v0  ;;  %440 = vmatpush.bf16.msra.mxu3 %v390_v0  ;;  %v384_v6 = vld [vmem:[%s549_s1 + $0x8] sm:$0xff]  ;;  %v383_v7 = vld [vmem:[%s549_s1] sm:$0xff]  ;;  %v377_v9 = vld [vmem:[%s550_s0 + $0x10] sm:$0xff] }
   0x4   :  { %v375_v8 = vld [vmem:[%s550_s0] sm:$0xff]  ;;  %v381_v11 = vld [vmem:[%s550_s0 + $0x30] sm:$0xff]  ;;  %v376_v12 = vld [vmem:[%s550_s0 + $0x8] sm:$0xff] }
   0x5   :  { %v379_v10 = vld [vmem:[%s550_s0 + $0x20] sm:$0xff]  ;;  %v378_v13 = vld [vmem:[%s550_s0 + $0x18] sm:$0xff]  ;;  %v380_v14 = vld [vmem:[%s550_s0 + $0x28] sm:$0xff] }
   0x6   :  { %176 = vmatpush.bf16.msra.mxu0 %v389_v1  ;;  %441 = vmatpush.bf16.msra.mxu1 %v389_v1  ;;  %v382_v15 = vld [vmem:[%s550_s0 + $0x38] sm:$0xff] }
   0x7   :  { %442 = vmatpush.bf16.msra.mxu2 %v389_v1  ;;  %443 = vmatpush.bf16.msra.mxu3 %v389_v1 }
   0xa   :  { %177 = vmatpush.bf16.msra.mxu0 %v388_v2  ;;  %444 = vmatpush.bf16.msra.mxu1 %v388_v2 }
   0xb   :  { %445 = vmatpush.bf16.msra.mxu2 %v388_v2  ;;  %446 = vmatpush.bf16.msra.mxu3 %v388_v2 }
   0xe   :  { %178 = vmatpush.bf16.msra.mxu0 %v387_v3  ;;  %447 = vmatpush.bf16.msra.mxu1 %v387_v3 }
   0xf   :  { %448 = vmatpush.bf16.msra.mxu2 %v387_v3  ;;  %449 = vmatpush.bf16.msra.mxu3 %v387_v3 }
  0x12   :  { %179 = vmatpush.bf16.msra.mxu0 %v386_v4  ;;  %450 = vmatpush.bf16.msra.mxu1 %v386_v4 }
  0x13   :  { %451 = vmatpush.bf16.msra.mxu2 %v386_v4  ;;  %452 = vmatpush.bf16.msra.mxu3 %v386_v4 }
  0x16   :  { %180 = vmatpush.bf16.msra.mxu0 %v385_v5  ;;  %453 = vmatpush.bf16.msra.mxu1 %v385_v5 }
  0x17   :  { %454 = vmatpush.bf16.msra.mxu2 %v385_v5  ;;  %455 = vmatpush.bf16.msra.mxu3 %v385_v5 }
  0x1a   :  { %181 = vmatpush.bf16.msra.mxu0 %v384_v6  ;;  %456 = vmatpush.bf16.msra.mxu1 %v384_v6 }
  0x1b   :  { %457 = vmatpush.bf16.msra.mxu2 %v384_v6  ;;  %458 = vmatpush.bf16.msra.mxu3 %v384_v6 }
  0x1e   :  { %182 = vmatpush.bf16.msra.mxu0 %v383_v7  ;;  %459 = vmatpush.bf16.msra.mxu1 %v383_v7 }
  0x1f   :  { %460 = vmatpush.bf16.msra.mxu2 %v383_v7  ;;  %461 = vmatpush.bf16.msra.mxu3 %v383_v7 }
  0x21   :  { %183 = vmatmul.bf16.vlgmr.msra.gmra.mxu0 %v375_v8  ;;  %193 = vmatmul.bf16.vlgmr.msra.gmra.mxu1 %v377_v9 }
  0x22   :  { %203 = vmatmul.bf16.vlgmr.msra.gmra.mxu2 %v379_v10  ;;  %213 = vmatmul.bf16.vlgmr.msra.gmra.mxu3 %v381_v11 }
  0x31   :  { %188 = vmatmul.bf16.gmra.mxu0 %v376_v12  ;;  %198 = vmatmul.bf16.gmra.mxu1 %v378_v13 }
  0x32   :  { %208 = vmatmul.bf16.gmra.mxu2 %v380_v14  ;;  %218 = vmatmul.bf16.gmra.mxu3 %v382_v15 }
  0x9e   :  { %v184_v16 = vpop.f32.mrf.mxu0  ;;  %v194_v17 = vpop.f32.mrf.mxu1 }
  0xa5   :  { %v204_v18 = vpop.f32.mrf.mxu2  ;;  %v214_v19 = vpop.f32.mrf.mxu3 }
  0xa6   :  { %v186_v20 = vpop.f32.mrf.mxu0  ;;  %v196_v21 = vpop.f32.mrf.mxu1 }
  0xa7   :  { %v394_v22 = vpack.c.bf16 %v186_v20, %v184_v16  ;;  %v404_v23 = vpack.c.bf16 %v196_v21, %v194_v17 }
  0xa9   :  { %395 = vst [vmem:[%s551_s2] sm:$0xff] %v394_v22  }
  0xaa   :  { %432 = vst [vmem:[%s551_s2 + $0x10] sm:$0xff] %v404_v23  }
  0xad   :  { %v206_v24 = vpop.f32.mrf.mxu2  ;;  %v216_v25 = vpop.f32.mrf.mxu3 }
  0xae   :  { %v414_v26 = vpack.c.bf16 %v206_v24, %v204_v18  ;;  %v424_v27 = vpack.c.bf16 %v216_v25, %v214_v19  ;;  %v189_v28 = vpop.f32.mrf.mxu0  ;;  %v199_v29 = vpop.f32.mrf.mxu1 }
  0xb0   :  { %434 = vst [vmem:[%s551_s2 + $0x20] sm:$0xff] %v414_v26  }
  0xb1   :  { %436 = vst [vmem:[%s551_s2 + $0x30] sm:$0xff] %v424_v27  }
  0xb5   :  { %v209_v30 = vpop.f32.mrf.mxu2  ;;  %v219_v31 = vpop.f32.mrf.mxu3 }
  0xb6   :  { %v191_v32 = vpop.f32.mrf.mxu0  ;;  %v201_v33 = vpop.f32.mrf.mxu1 }
  0xb7   :  { %v399_v34 = vpack.c.bf16 %v191_v32, %v189_v28  ;;  %v409_v35 = vpack.c.bf16 %v201_v33, %v199_v29 }
  0xb9   :  { %431 = vst [vmem:[%s551_s2 + $0x8] sm:$0xff] %v399_v34  }
  0xba   :  { %433 = vst [vmem:[%s551_s2 + $0x18] sm:$0xff] %v409_v35  }
  0xbd   :  { %v211_v36 = vpop.f32.mrf.mxu2  ;;  %v221_v37 = vpop.f32.mrf.mxu3 }
  0xbe   :  { %v419_v38 = vpack.c.bf16 %v211_v36, %v209_v30  ;;  %v429_v39 = vpack.c.bf16 %v221_v37, %v219_v31 }
  0xc0   :  { %435 = vst [vmem:[%s551_s2 + $0x28] sm:$0xff] %v419_v38  }
  0xc1   :  { %437 = vst [vmem:[%s551_s2 + $0x38] sm:$0xff] %v429_v39  }

// kernel: enhanced_gcn_forward.7
= control target key start
LH: loop header
LB: loop body
LE: loop exit
PB: predicated region body
PF: predicated region fallthrough
CT: control target
= control target key end

     0   :  { %s604_s1 = inlined_call_operand.vmem [shape: bf16[128,128], index: 1, kind: input, shape index: {}]   ;;  %s605_s2 = inlined_call_operand.vmem [shape: f32[1,128], index: 2, kind: input, shape index: {}]   ;;  %s606_s0 = inlined_call_operand.vmem [shape: bf16[128,128], index: 0, kind: input, shape index: {}]   ;;  %s607_s3 = inlined_call_operand.vmem [shape: bf16[128,128], index: 3, kind: output, shape index: {}]  }
   0x1   :  { %v428_v0 = vld [vmem:[%s604_s1 + $0x38] sm:$0xff]  ;;  %v427_v1 = vld [vmem:[%s604_s1 + $0x30] sm:$0xff]  ;;  %v426_v2 = vld [vmem:[%s604_s1 + $0x28] sm:$0xff] }
   0x2   :  { %183 = vmatpush.bf16.msra.mxu0 %v428_v0  ;;  %484 = vmatpush.bf16.msra.mxu1 %v428_v0  ;;  %v425_v3 = vld [vmem:[%s604_s1 + $0x20] sm:$0xff]  ;;  %v424_v4 = vld [vmem:[%s604_s1 + $0x18] sm:$0xff]  ;;  %v423_v5 = vld [vmem:[%s604_s1 + $0x10] sm:$0xff] }
   0x3   :  { %485 = vmatpush.bf16.msra.mxu2 %v428_v0  ;;  %486 = vmatpush.bf16.msra.mxu3 %v428_v0  ;;  %v422_v6 = vld [vmem:[%s604_s1 + $0x8] sm:$0xff]  ;;  %v421_v7 = vld [vmem:[%s604_s1] sm:$0xff]  ;;  %v431_v9 = vld [vmem:[%s606_s0 + $0x10] sm:$0xff] }
   0x4   :  { %v429_v8 = vld [vmem:[%s606_s0] sm:$0xff]  ;;  %v435_v11 = vld [vmem:[%s606_s0 + $0x30] sm:$0xff]  ;;  %v430_v12 = vld [vmem:[%s606_s0 + $0x8] sm:$0xff] }
   0x5   :  { %v433_v10 = vld [vmem:[%s606_s0 + $0x20] sm:$0xff]  ;;  %v432_v13 = vld [vmem:[%s606_s0 + $0x18] sm:$0xff]  ;;  %v434_v14 = vld [vmem:[%s606_s0 + $0x28] sm:$0xff] }
   0x6   :  { %184 = vmatpush.bf16.msra.mxu0 %v427_v1  ;;  %487 = vmatpush.bf16.msra.mxu1 %v427_v1  ;;  %v436_v15 = vld [vmem:[%s606_s0 + $0x38] sm:$0xff]  ;;  %v508_v18 = vld [vmem:[%s605_s2] ss:$0 sm:$0xff] }
   0x7   :  { %488 = vmatpush.bf16.msra.mxu2 %v427_v1  ;;  %489 = vmatpush.bf16.msra.mxu3 %v427_v1 }
   0xa   :  { %185 = vmatpush.bf16.msra.mxu0 %v426_v2  ;;  %490 = vmatpush.bf16.msra.mxu1 %v426_v2 }
   0xb   :  { %491 = vmatpush.bf16.msra.mxu2 %v426_v2  ;;  %492 = vmatpush.bf16.msra.mxu3 %v426_v2 }
   0xe   :  { %186 = vmatpush.bf16.msra.mxu0 %v425_v3  ;;  %493 = vmatpush.bf16.msra.mxu1 %v425_v3 }
   0xf   :  { %494 = vmatpush.bf16.msra.mxu2 %v425_v3  ;;  %495 = vmatpush.bf16.msra.mxu3 %v425_v3 }
  0x12   :  { %187 = vmatpush.bf16.msra.mxu0 %v424_v4  ;;  %496 = vmatpush.bf16.msra.mxu1 %v424_v4 }
  0x13   :  { %497 = vmatpush.bf16.msra.mxu2 %v424_v4  ;;  %498 = vmatpush.bf16.msra.mxu3 %v424_v4 }
  0x16   :  { %188 = vmatpush.bf16.msra.mxu0 %v423_v5  ;;  %499 = vmatpush.bf16.msra.mxu1 %v423_v5 }
  0x17   :  { %500 = vmatpush.bf16.msra.mxu2 %v423_v5  ;;  %501 = vmatpush.bf16.msra.mxu3 %v423_v5 }
  0x1a   :  { %189 = vmatpush.bf16.msra.mxu0 %v422_v6  ;;  %502 = vmatpush.bf16.msra.mxu1 %v422_v6 }
  0x1b   :  { %503 = vmatpush.bf16.msra.mxu2 %v422_v6  ;;  %504 = vmatpush.bf16.msra.mxu3 %v422_v6 }
  0x1e   :  { %190 = vmatpush.bf16.msra.mxu0 %v421_v7  ;;  %505 = vmatpush.bf16.msra.mxu1 %v421_v7 }
  0x1f   :  { %506 = vmatpush.bf16.msra.mxu2 %v421_v7  ;;  %507 = vmatpush.bf16.msra.mxu3 %v421_v7 }
  0x21   :  { %191 = vmatmul.bf16.vlgmr.msra.gmra.mxu0 %v429_v8  ;;  %201 = vmatmul.bf16.vlgmr.msra.gmra.mxu1 %v431_v9 }
  0x22   :  { %211 = vmatmul.bf16.vlgmr.msra.gmra.mxu2 %v433_v10  ;;  %221 = vmatmul.bf16.vlgmr.msra.gmra.mxu3 %v435_v11 }
  0x31   :  { %196 = vmatmul.bf16.gmra.mxu0 %v430_v12  ;;  %206 = vmatmul.bf16.gmra.mxu1 %v432_v13 }
  0x32   :  { %216 = vmatmul.bf16.gmra.mxu2 %v434_v14  ;;  %226 = vmatmul.bf16.gmra.mxu3 %v436_v15 }
  0x9e   :  { %v192_v16 = vpop.f32.mrf.mxu0  ;;  %v202_v17 = vpop.f32.mrf.mxu1 }
  0x9f   :  { %v287_v19 = vadd.f32 %v508_v18, %v192_v16  ;;  %v291_v20 = vadd.f32 %v508_v18, %v202_v17 }
  0xa1   :  { %v303_v27 = vmax.f32 %v287_v19, 0.0  ;;  %v307_v28 = vmax.f32 %v291_v20, 0.0 }
  0xa5   :  { %v212_v21 = vpop.f32.mrf.mxu2  ;;  %v222_v22 = vpop.f32.mrf.mxu3 }
  0xa6   :  { %v194_v23 = vpop.f32.mrf.mxu0  ;;  %v204_v24 = vpop.f32.mrf.mxu1  ;;  %v295_v33 = vadd.f32 %v508_v18, %v212_v21  ;;  %v299_v34 = vadd.f32 %v508_v18, %v222_v22 }
  0xa7   :  { %v288_v25 = vadd.f32 %v508_v18, %v194_v23  ;;  %v292_v26 = vadd.f32 %v508_v18, %v204_v24 }
  0xa8   :  { %v311_v41 = vmax.f32 %v295_v33, 0.0  ;;  %v315_v42 = vmax.f32 %v299_v34, 0.0 }
  0xa9   :  { %v304_v29 = vmax.f32 %v288_v25, 0.0  ;;  %v308_v30 = vmax.f32 %v292_v26, 0.0 }
  0xab   :  { %v440_v31 = vpack.c.bf16 %v304_v29, %v303_v27  ;;  %v450_v32 = vpack.c.bf16 %v308_v30, %v307_v28 }
  0xad   :  { %441 = vst [vmem:[%s607_s3] sm:$0xff] %v440_v31   ;;  %v214_v35 = vpop.f32.mrf.mxu2  ;;  %v224_v36 = vpop.f32.mrf.mxu3 }
  0xae   :  { %478 = vst [vmem:[%s607_s3 + $0x10] sm:$0xff] %v450_v32   ;;  %v296_v37 = vadd.f32 %v508_v18, %v214_v35  ;;  %v300_v38 = vadd.f32 %v508_v18, %v224_v36  ;;  %v197_v39 = vpop.f32.mrf.mxu0  ;;  %v207_v40 = vpop.f32.mrf.mxu1 }
  0xaf   :  { %v289_v47 = vadd.f32 %v508_v18, %v197_v39  ;;  %v293_v48 = vadd.f32 %v508_v18, %v207_v40 }
  0xb0   :  { %v312_v43 = vmax.f32 %v296_v37, 0.0  ;;  %v316_v44 = vmax.f32 %v300_v38, 0.0 }
  0xb1   :  { %v305_v55 = vmax.f32 %v289_v47, 0.0  ;;  %v309_v56 = vmax.f32 %v293_v48, 0.0 }
  0xb2   :  { %v460_v45 = vpack.c.bf16 %v312_v43, %v311_v41  ;;  %v470_v46 = vpack.c.bf16 %v316_v44, %v315_v42 }
  0xb4   :  { %480 = vst [vmem:[%s607_s3 + $0x20] sm:$0xff] %v460_v45  }
  0xb5   :  { %482 = vst [vmem:[%s607_s3 + $0x30] sm:$0xff] %v470_v46   ;;  %v217_v49 = vpop.f32.mrf.mxu2  ;;  %v227_v50 = vpop.f32.mrf.mxu3 }
  0xb6   :  { %v199_v51 = vpop.f32.mrf.mxu0  ;;  %v209_v52 = vpop.f32.mrf.mxu1  ;;  %v297_v61 = vadd.f32 %v508_v18, %v217_v49  ;;  %v301_v62 = vadd.f32 %v508_v18, %v227_v50 }
  0xb7   :  { %v290_v53 = vadd.f32 %v508_v18, %v199_v51  ;;  %v294_v54 = vadd.f32 %v508_v18, %v209_v52 }
  0xb8   :  { %v313_v3 = vmax.f32 %v297_v61, 0.0  ;;  %v317_v4 = vmax.f32 %v301_v62, 0.0 }
  0xb9   :  { %v306_v57 = vmax.f32 %v290_v53, 0.0  ;;  %v310_v58 = vmax.f32 %v294_v54, 0.0 }
  0xbb   :  { %v445_v59 = vpack.c.bf16 %v306_v57, %v305_v55  ;;  %v455_v60 = vpack.c.bf16 %v310_v58, %v309_v56 }
  0xbd   :  { %477 = vst [vmem:[%s607_s3 + $0x8] sm:$0xff] %v445_v59   ;;  %v219_v63 = vpop.f32.mrf.mxu2  ;;  %v229_v0 = vpop.f32.mrf.mxu3 }
  0xbe   :  { %479 = vst [vmem:[%s607_s3 + $0x18] sm:$0xff] %v455_v60   ;;  %v298_v1 = vadd.f32 %v508_v18, %v219_v63  ;;  %v302_v2 = vadd.f32 %v508_v18, %v229_v0 }
  0xc0   :  { %v314_v5 = vmax.f32 %v298_v1, 0.0  ;;  %v318_v6 = vmax.f32 %v302_v2, 0.0 }
  0xc2   :  { %v465_v7 = vpack.c.bf16 %v314_v5, %v313_v3  ;;  %v475_v8 = vpack.c.bf16 %v318_v6, %v317_v4 }
  0xc4   :  { %481 = vst [vmem:[%s607_s3 + $0x28] sm:$0xff] %v465_v7  }
  0xc5   :  { %483 = vst [vmem:[%s607_s3 + $0x38] sm:$0xff] %v475_v8  }

// kernel: enhanced_gcn_forward.11
= control target key start
LH: loop header
LB: loop body
LE: loop exit
PB: predicated region body
PF: predicated region fallthrough
CT: control target
= control target key end

     0   :  { %s549_s1 = inlined_call_operand.vmem [shape: bf16[128,128], index: 1, kind: input, shape index: {}]   ;;  %s550_s2 = inlined_call_operand.vmem [shape: f32[1,128], index: 2, kind: input, shape index: {}]   ;;  %s551_s0 = inlined_call_operand.vmem [shape: bf16[128,128], index: 0, kind: input, shape index: {}]   ;;  %s552_s3 = inlined_call_operand.vmem [shape: f32[128,128], index: 3, kind: output, shape index: {}]  }
   0x1   :  { %v396_v0 = vld [vmem:[%s549_s1 + $0x38] sm:$0xff]  ;;  %v395_v1 = vld [vmem:[%s549_s1 + $0x30] sm:$0xff]  ;;  %v394_v2 = vld [vmem:[%s549_s1 + $0x28] sm:$0xff] }
   0x2   :  { %183 = vmatpush.bf16.msra.mxu0 %v396_v0  ;;  %405 = vmatpush.bf16.msra.mxu1 %v396_v0  ;;  %v393_v3 = vld [vmem:[%s549_s1 + $0x20] sm:$0xff]  ;;  %v392_v4 = vld [vmem:[%s549_s1 + $0x18] sm:$0xff]  ;;  %v391_v5 = vld [vmem:[%s549_s1 + $0x10] sm:$0xff] }
   0x3   :  { %406 = vmatpush.bf16.msra.mxu2 %v396_v0  ;;  %407 = vmatpush.bf16.msra.mxu3 %v396_v0  ;;  %v390_v6 = vld [vmem:[%s549_s1 + $0x8] sm:$0xff]  ;;  %v389_v7 = vld [vmem:[%s549_s1] sm:$0xff]  ;;  %v399_v9 = vld [vmem:[%s551_s0 + $0x10] sm:$0xff] }
   0x4   :  { %v397_v8 = vld [vmem:[%s551_s0] sm:$0xff]  ;;  %v403_v11 = vld [vmem:[%s551_s0 + $0x30] sm:$0xff]  ;;  %v398_v12 = vld [vmem:[%s551_s0 + $0x8] sm:$0xff] }
   0x5   :  { %v401_v10 = vld [vmem:[%s551_s0 + $0x20] sm:$0xff]  ;;  %v400_v13 = vld [vmem:[%s551_s0 + $0x18] sm:$0xff]  ;;  %v402_v14 = vld [vmem:[%s551_s0 + $0x28] sm:$0xff] }
   0x6   :  { %184 = vmatpush.bf16.msra.mxu0 %v395_v1  ;;  %408 = vmatpush.bf16.msra.mxu1 %v395_v1  ;;  %v404_v15 = vld [vmem:[%s551_s0 + $0x38] sm:$0xff]  ;;  %v429_v16 = vld [vmem:[%s550_s2] ss:$0 sm:$0xff] }
   0x7   :  { %409 = vmatpush.bf16.msra.mxu2 %v395_v1  ;;  %410 = vmatpush.bf16.msra.mxu3 %v395_v1 }
   0xa   :  { %185 = vmatpush.bf16.msra.mxu0 %v394_v2  ;;  %411 = vmatpush.bf16.msra.mxu1 %v394_v2 }
   0xb   :  { %412 = vmatpush.bf16.msra.mxu2 %v394_v2  ;;  %413 = vmatpush.bf16.msra.mxu3 %v394_v2 }
   0xe   :  { %186 = vmatpush.bf16.msra.mxu0 %v393_v3  ;;  %414 = vmatpush.bf16.msra.mxu1 %v393_v3 }
   0xf   :  { %415 = vmatpush.bf16.msra.mxu2 %v393_v3  ;;  %416 = vmatpush.bf16.msra.mxu3 %v393_v3 }
  0x12   :  { %187 = vmatpush.bf16.msra.mxu0 %v392_v4  ;;  %417 = vmatpush.bf16.msra.mxu1 %v392_v4 }
  0x13   :  { %418 = vmatpush.bf16.msra.mxu2 %v392_v4  ;;  %419 = vmatpush.bf16.msra.mxu3 %v392_v4 }
  0x16   :  { %188 = vmatpush.bf16.msra.mxu0 %v391_v5  ;;  %420 = vmatpush.bf16.msra.mxu1 %v391_v5 }
  0x17   :  { %421 = vmatpush.bf16.msra.mxu2 %v391_v5  ;;  %422 = vmatpush.bf16.msra.mxu3 %v391_v5 }
  0x1a   :  { %189 = vmatpush.bf16.msra.mxu0 %v390_v6  ;;  %423 = vmatpush.bf16.msra.mxu1 %v390_v6 }
  0x1b   :  { %424 = vmatpush.bf16.msra.mxu2 %v390_v6  ;;  %425 = vmatpush.bf16.msra.mxu3 %v390_v6 }
  0x1e   :  { %190 = vmatpush.bf16.msra.mxu0 %v389_v7  ;;  %426 = vmatpush.bf16.msra.mxu1 %v389_v7 }
  0x1f   :  { %427 = vmatpush.bf16.msra.mxu2 %v389_v7  ;;  %428 = vmatpush.bf16.msra.mxu3 %v389_v7 }
  0x21   :  { %191 = vmatmul.bf16.vlgmr.msra.gmra.mxu0 %v397_v8  ;;  %201 = vmatmul.bf16.vlgmr.msra.gmra.mxu1 %v399_v9 }
  0x22   :  { %211 = vmatmul.bf16.vlgmr.msra.gmra.mxu2 %v401_v10  ;;  %221 = vmatmul.bf16.vlgmr.msra.gmra.mxu3 %v403_v11 }
  0x31   :  { %196 = vmatmul.bf16.gmra.mxu0 %v398_v12  ;;  %206 = vmatmul.bf16.gmra.mxu1 %v400_v13 }
  0x32   :  { %216 = vmatmul.bf16.gmra.mxu2 %v402_v14  ;;  %226 = vmatmul.bf16.gmra.mxu3 %v404_v15 }
  0x9e   :  { %v192_v17 = vpop.f32.mrf.mxu0  ;;  %v202_v18 = vpop.f32.mrf.mxu1 }
  0x9f   :  { %v287_v19 = vadd.f32 %v429_v16, %v192_v17  ;;  %v291_v20 = vadd.f32 %v429_v16, %v202_v18 }
  0xa1   :  { %303 = vst [vmem:[%s552_s3] sm:$0xff] %v287_v19 }
  0xa2   :  { %307 = vst [vmem:[%s552_s3 + $0x20] sm:$0xff] %v291_v20 }
  0xa5   :  { %v212_v21 = vpop.f32.mrf.mxu2  ;;  %v222_v22 = vpop.f32.mrf.mxu3 }
  0xa6   :  { %v295_v23 = vadd.f32 %v429_v16, %v212_v21  ;;  %v299_v24 = vadd.f32 %v429_v16, %v222_v22  ;;  %v194_v25 = vpop.f32.mrf.mxu0  ;;  %v204_v26 = vpop.f32.mrf.mxu1 }
  0xa7   :  { %v288_v27 = vadd.f32 %v429_v16, %v194_v25  ;;  %v292_v28 = vadd.f32 %v429_v16, %v204_v26 }
  0xa8   :  { %311 = vst [vmem:[%s552_s3 + $0x40] sm:$0xff] %v295_v23 }
  0xa9   :  { %315 = vst [vmem:[%s552_s3 + $0x60] sm:$0xff] %v299_v24 }
  0xaa   :  { %304 = vst [vmem:[%s552_s3 + $0x8] sm:$0xff] %v288_v27 }
  0xab   :  { %308 = vst [vmem:[%s552_s3 + $0x28] sm:$0xff] %v292_v28 }
  0xad   :  { %v214_v29 = vpop.f32.mrf.mxu2  ;;  %v224_v30 = vpop.f32.mrf.mxu3 }
  0xae   :  { %v296_v31 = vadd.f32 %v429_v16, %v214_v29  ;;  %v300_v32 = vadd.f32 %v429_v16, %v224_v30  ;;  %v197_v33 = vpop.f32.mrf.mxu0  ;;  %v207_v34 = vpop.f32.mrf.mxu1 }
  0xaf   :  { %v289_v35 = vadd.f32 %v429_v16, %v197_v33  ;;  %v293_v36 = vadd.f32 %v429_v16, %v207_v34 }
  0xb0   :  { %312 = vst [vmem:[%s552_s3 + $0x48] sm:$0xff] %v296_v31 }
  0xb1   :  { %316 = vst [vmem:[%s552_s3 + $0x68] sm:$0xff] %v300_v32 }
  0xb2   :  { %305 = vst [vmem:[%s552_s3 + $0x10] sm:$0xff] %v289_v35 }
  0xb3   :  { %309 = vst [vmem:[%s552_s3 + $0x30] sm:$0xff] %v293_v36 }
  0xb5   :  { %v217_v37 = vpop.f32.mrf.mxu2  ;;  %v227_v38 = vpop.f32.mrf.mxu3 }
  0xb6   :  { %v297_v39 = vadd.f32 %v429_v16, %v217_v37  ;;  %v301_v40 = vadd.f32 %v429_v16, %v227_v38  ;;  %v199_v41 = vpop.f32.mrf.mxu0  ;;  %v209_v42 = vpop.f32.mrf.mxu1 }
  0xb7   :  { %v290_v43 = vadd.f32 %v429_v16, %v199_v41  ;;  %v294_v44 = vadd.f32 %v429_v16, %v209_v42 }
  0xb8   :  { %313 = vst [vmem:[%s552_s3 + $0x50] sm:$0xff] %v297_v39 }
  0xb9   :  { %317 = vst [vmem:[%s552_s3 + $0x70] sm:$0xff] %v301_v40 }
  0xba   :  { %306 = vst [vmem:[%s552_s3 + $0x18] sm:$0xff] %v290_v43 }
  0xbb   :  { %310 = vst [vmem:[%s552_s3 + $0x38] sm:$0xff] %v294_v44 }
  0xbd   :  { %v219_v45 = vpop.f32.mrf.mxu2  ;;  %v229_v46 = vpop.f32.mrf.mxu3 }
  0xbe   :  { %v298_v47 = vadd.f32 %v429_v16, %v219_v45  ;;  %v302_v48 = vadd.f32 %v429_v16, %v229_v46 }
  0xc0   :  { %314 = vst [vmem:[%s552_s3 + $0x58] sm:$0xff] %v298_v47 }
  0xc1   :  { %318 = vst [vmem:[%s552_s3 + $0x78] sm:$0xff] %v302_v48 }

</bundles_post_ra>
